<compile_context>
chip_gen: v7x
topology: tpu7x:2x2x1
jax: 0.10.0
libtpu: 0.0.40
codegen_flags: <defaults>
</compile_context>

<pallas_src>
import functools
import math

import jax
import jax.numpy as jnp
from jax.experimental import pallas as pl
from jax.experimental.pallas import tpu as pltpu


def _round_up(v, mult):
    return ((v + mult - 1) // mult) * mult


def create_dct(n, m, dtype=jnp.float32):
    """Orthonormal DCT-II matrix of shape (m, n).  Row k, column i."""
    i = jnp.arange(n, dtype=jnp.float32)[None, :]
    k = jnp.arange(m, dtype=jnp.float32)[:, None]
    q = jnp.cos(jnp.pi * (2.0 * i + 1.0) * k / (2.0 * n)) * jnp.sqrt(2.0 / n)
    q = q.at[0].multiply(1.0 / jnp.sqrt(2.0))
    return q.astype(dtype)


def _const_offsets(m, hid):
    """Row offsets of the packed constant buffer (shared by pack + kernel)."""
    r_w = _round_up(m, 8)            # W_qkv^T rows (b_qkv^T packed in col emb)
    r_wo = r_w + 3 * hid             # W_o^T rows
    r_bo = r_wo + hid                # b_o row
    rows = _round_up(r_bo + 1, 8)
    return r_w, r_wo, r_bo, rows


def pack_constants(q_dct, params, *, n_heads, head_dim):
    """Pack all constant operands into a single padded f32 buffer (built once)."""
    wq, bq, wk, bk, wv, bv, wo, bo = params
    hid = n_heads * head_dim
    m, n = q_dct.shape
    emb = wq.shape[0]

    w_qkv_t = jnp.concatenate([wq, wk, wv], axis=1).T.astype(jnp.float32)  # (3h, emb)
    b_qkv_t = jnp.concatenate([bq, bk, bv], axis=1).T.astype(jnp.float32)  # (3h, 1)
    w_o_t = wo.T.astype(jnp.float32)                                       # (hid, hid)
    b_o = bo.astype(jnp.float32).reshape(1, hid)                           # (1, hid)

    r_w, r_wo, r_bo, rows = _const_offsets(m, hid)
    cols = _round_up(max(n, emb + 1, hid), 128)

    buf = jnp.zeros((rows, cols), jnp.float32)
    buf = buf.at[0:m, 0:n].set(q_dct.astype(jnp.float32))
    buf = buf.at[r_w:r_w + 3 * hid, 0:emb].set(w_qkv_t)
    buf = buf.at[r_w:r_w + 3 * hid, emb:emb + 1].set(b_qkv_t)
    buf = buf.at[r_wo:r_wo + hid, 0:hid].set(w_o_t)
    buf = buf.at[r_bo:r_bo + 1, 0:hid].set(b_o)
    return buf


def dct_mhsa_kernel(x_ref, const_ref, out_ref, *, n_heads, head_dim, n, m, emb,
                    batch_block):
    hid = n_heads * head_dim
    scale = 1.0 / math.sqrt(head_dim)
    B = batch_block
    r_w, r_wo, r_bo, _ = _const_offsets(m, hid)

    # Static views into the single packed constant buffer (all f32).
    Q = const_ref[0:m, 0:n]                                # (m, n)
    w_qkv_t = const_ref[r_w:r_w + 3 * hid, 0:emb]          # (3*hid, emb)
    b_qkv_t = const_ref[r_w:r_w + 3 * hid, emb:emb + 1]    # (3*hid, 1)
    w_o_t = const_ref[r_wo:r_wo + hid, 0:hid]              # (hid_out, hid_in)
    b_o = const_ref[r_bo:r_bo + 1, 0:hid]                  # (1, hid)

    # ---- Hoisted fused Q/K/V projection over the whole block (no bias yet;
    # the DCT commutes with the feature projection, bias is added post-DCT).
    # (3*hid, emb) x (B*n, emb)^T -> (3*hid, B*n), features on sublanes.
    x_flat = x_ref[...].reshape(B * n, emb).astype(jnp.float32)
    qkv_t_flat = jax.lax.dot_general(
        w_qkv_t, x_flat, (((1,), (1,)), ((), ())),
        preferred_element_type=jnp.float32)                # (3*hid, B*n)

    # ---- Per-batch: tiny DCT + batched-over-heads attention (static unroll
    # keeps >=2 independent chains in flight for the scheduler).
    attn_cols = []
    for b in range(B):
        qkv_b = qkv_t_flat[:, b * n:(b + 1) * n]           # (3*hid, n)

        # DCT along the sequence axis + bias: (3*hid, n) x (m, n)^T -> (3*hid, m)
        x_dct_t = jax.lax.dot_general(
            qkv_b, Q, (((1,), (1,)), ((), ())),
            preferred_element_type=jnp.float32) + b_qkv_t

        # (3*hid, m) -> (3*H, d, m): leading-dim split (head_dim=8 sublane tile).
        qkv_h = x_dct_t.reshape(3 * n_heads, head_dim, m)
        q_t = qkv_h[:n_heads]                              # (H, d, m)
        k_t = qkv_h[n_heads:2 * n_heads]                   # (H, d, m)
        v_t = qkv_h[2 * n_heads:]                          # (H, d, m)

        # s[h, i, j] = sum_d q[h, d, i] * k[h, d, j]
        s = jax.lax.dot_general(
            q_t, k_t, (((1,), (1,)), ((0,), (0,))),
            preferred_element_type=jnp.float32) * scale    # (H, m, m)

        # Softmax on a packed 2-D (H*m, m) view (leading-dim merge).
        s2 = s.reshape(n_heads * m, m)
        s2 = s2 - jnp.max(s2, axis=-1, keepdims=True)
        p2 = jnp.exp(s2)
        denom = jnp.sum(p2, axis=-1, keepdims=True)
        inv = pl.reciprocal(denom, approx=True)
        inv = inv * (2.0 - denom * inv)                    # one Newton refinement
        p = (p2 * inv).reshape(n_heads, m, m)

        # o[h, d, i] = sum_j v[h, d, j] * p[h, i, j]
        o_t = jax.lax.dot_general(
            v_t, p, (((2,), (2,)), ((0,), (0,))),
            preferred_element_type=jnp.float32)            # (H, d, m)
        attn_cols.append(o_t.reshape(hid, m))              # merge heads (leading)

    attn_t = jnp.concatenate(attn_cols, axis=1)            # (hid, B*m)

    # ---- Hoisted output projection (W_o commutes with the inverse DCT):
    # (hid_out, hid_in) x (hid_in, B*m) -> (hid_out, B*m)
    ao_t = jnp.dot(w_o_t, attn_t, preferred_element_type=jnp.float32)

    # ---- Tiny per-batch inverse DCT + bias, then ONE store for the block.
    outs = []
    for b in range(B):
        ao_b = ao_t[:, b * m:(b + 1) * m]                  # (hid, m)
        out_b = jax.lax.dot_general(
            Q, ao_b, (((0,), (1,)), ((), ())),
            preferred_element_type=jnp.float32) + b_o      # (n, hid)
        outs.append(out_b)
    out_ref[...] = jnp.stack(outs, axis=0).astype(out_ref.dtype)


def _default_batch_block(bs):
    """v7x (2 TensorCores): keep a 2-way parallel batch grid.  Single-TC chips
    (v5e/v6e): fold as much batch as possible into one step.  Always cap the
    static unroll at 8 to bound vreg live ranges."""
    try:
        kind = jax.devices()[0].device_kind.lower()
    except Exception:
        kind = ""
    bb = max(1, bs // 2) if "v7" in kind else bs
    return max(1, min(bb, 8))


def dct_mhsa_forward(x, const_buf, *, n_heads, head_dim, m, batch_block=None):
    bs, n, emb = x.shape
    hid = n_heads * head_dim

    if batch_block is None:
        batch_block = _default_batch_block(bs)
    batch_block = max(1, min(batch_block, bs))
    while bs % batch_block:                 # force a divisor of the batch size
        batch_block -= 1
    grid = (bs // batch_block,)

    kernel = functools.partial(dct_mhsa_kernel, n_heads=n_heads,
                               head_dim=head_dim, n=n, m=m, emb=emb,
                               batch_block=batch_block)
    rows, cols = const_buf.shape

    return pl.pallas_call(
        kernel,
        out_shape=jax.ShapeDtypeStruct((bs, n, hid), x.dtype),
        grid=grid,
        in_specs=[
            pl.BlockSpec((batch_block, n, emb), lambda i: (i, 0, 0)),   # X
            pl.BlockSpec((rows, cols), lambda i: (0, 0)),               # packed consts
        ],
        out_specs=pl.BlockSpec((batch_block, n, hid), lambda i: (i, 0, 0)),
        compiler_params=pltpu.CompilerParams(dimension_semantics=("parallel",)),
    )(x, const_buf)


def ref_forward(x, q_dct, params, *, n_heads, head_dim):
    """Pure-JAX reference mirroring the PyTorch forward."""
    wq, bq, wk, bk, wv, bv, wo, bo = params
    bs = x.shape[0]
    hid = n_heads * head_dim
    xd = jnp.einsum('mn,bne->bme', q_dct, x.astype(jnp.float32))
    q = xd @ wq + bq
    k = xd @ wk + bk
    v = xd @ wv + bv
    m = q.shape[1]

    def split(t):
        return t.reshape(bs, m, n_heads, head_dim).transpose(0, 2, 1, 3)

    qh, kh, vh = split(q), split(k), split(v)
    s = jnp.einsum('bhqd,bhkd->bhqk', qh, kh) / math.sqrt(head_dim)
    p = jax.nn.softmax(s, axis=-1)
    o = jnp.einsum('bhqk,bhkd->bhqd', p, vh)
    o = o.transpose(0, 2, 1, 3).reshape(bs, m, hid)
    xi = jnp.einsum('nm,bmh->bnh', q_dct.T, o)
    return xi @ wo + bo


if __name__ == "__main__":
    # Small config consistent with the module:
    #   emb_dim=32, n_heads=4, head_dim=8 (hid_dim=32), maxN=16, maxM=8, bs=2.
    bs, emb_dim = 2, 32
    n_heads, head_dim = 4, 8
    hid_dim = n_heads * head_dim
    max_n, max_m = 16, 8   # seq len (=n) and truncated DCT length (=m)

    key = jax.random.PRNGKey(0)
    keys = jax.random.split(key, 9)

    x = jax.random.normal(keys[0], (bs, max_n, emb_dim), dtype=jnp.float32)

    # Deterministic parameter init (Linear weights stored as (in, out)).
    def lin(kw, kb, fan_in, fan_out):
        w = jax.random.normal(kw, (fan_in, fan_out), jnp.float32) * 0.05
        b = jax.random.normal(kb, (1, fan_out), jnp.float32) * 0.01
        return w, b

    wq, bq = lin(keys[1], keys[2], emb_dim, hid_dim)
    wk, bk = lin(keys[3], keys[4], emb_dim, hid_dim)
    wv, bv = lin(keys[5], keys[6], emb_dim, hid_dim)
    wo, bo = lin(keys[7], keys[8], hid_dim, hid_dim)
    params = (wq, bq, wk, bk, wv, bv, wo, bo)

    q_dct = create_dct(n=max_n, m=max_m)   # (max_m, max_n)

    # Packed constant buffer is built ONCE (not per call).
    const_buf = pack_constants(q_dct, params, n_heads=n_heads, head_dim=head_dim)

    out = dct_mhsa_forward(x, const_buf, n_heads=n_heads, head_dim=head_dim,
                           m=max_m)
    out = jax.block_until_ready(out)

    ref = ref_forward(x, q_dct, params, n_heads=n_heads, head_dim=head_dim)
    assert out.shape == (bs, max_n, hid_dim), out.shape
    err = float(jnp.max(jnp.abs(out - ref)))
    assert jnp.allclose(out, ref, atol=1e-4, rtol=1e-4), err

    print("KERNEL_OK")
</pallas_src>

<mosaic_0001>
module attributes {stable_mosaic.version = 11 : i64} {
  func.func @dct_mhsa_kernel(%arg0: i32, %arg1: memref<2x16x32xf32, #tpu.memory_space<vmem>>, %arg2: memref<144x128xf32, #tpu.memory_space<vmem>>, %arg3: memref<2x16x32xf32, #tpu.memory_space<vmem>>) attributes {dimension_semantics = [#tpu.dimension_semantics<parallel>], iteration_bounds = array<i64: 1>, scalar_prefetch = 0 : i64, scratch_operands = 0 : i64, tpu.core_type = #tpu.core_type<tc>, window_params = [{transform_indices = @transform_0, window_bounds = array<i64: 2, 16, 32>}, {pipeline_mode = #tpu.pipeline_mode<synchronous>, transform_indices = @transform_1, window_bounds = array<i64: 144, 128>}, {transform_indices = @transform_2, window_bounds = array<i64: 2, 16, 32>}]} {
    %c0 = arith.constant 0 : index
    %c0_0 = arith.constant 0 : index
    %0 = vector.load %arg2[%c0, %c0_0] : memref<144x128xf32, #tpu.memory_space<vmem>>, vector<8x16xf32>
    %c8 = arith.constant 8 : index
    %c0_1 = arith.constant 0 : index
    %1 = vector.load %arg2[%c8, %c0_1] : memref<144x128xf32, #tpu.memory_space<vmem>>, vector<96x32xf32>
    %c8_2 = arith.constant 8 : index
    %c32 = arith.constant 32 : index
    %2 = vector.load %arg2[%c8_2, %c32] : memref<144x128xf32, #tpu.memory_space<vmem>>, vector<96x1xf32>
    %c104 = arith.constant 104 : index
    %c0_3 = arith.constant 0 : index
    %3 = vector.load %arg2[%c104, %c0_3] : memref<144x128xf32, #tpu.memory_space<vmem>>, vector<32x32xf32>
    %c136 = arith.constant 136 : index
    %c0_4 = arith.constant 0 : index
    %4 = vector.load %arg2[%c136, %c0_4] : memref<144x128xf32, #tpu.memory_space<vmem>>, vector<1x32xf32>
    %c0_5 = arith.constant 0 : index
    %c0_6 = arith.constant 0 : index
    %c0_7 = arith.constant 0 : index
    %5 = vector.load %arg1[%c0_5, %c0_6, %c0_7] : memref<2x16x32xf32, #tpu.memory_space<vmem>>, vector<2x16x32xf32>
    %6 = vector.shape_cast %5 : vector<2x16x32xf32> to vector<32x32xf32>
    %cst = arith.constant dense<0.000000e+00> : vector<96x32xf32>
    %7 = tpu.matmul %1, %6, %cst {dimension_numbers = #tpu.dot_dimension_numbers<[1], [1], [0], [0], [0, 0, 1, 0], [], []>} : vector<96x32xf32>, vector<32x32xf32>, vector<96x32xf32> -> vector<96x32xf32>
    %8 = vector.extract_strided_slice %7 {offsets = [0, 0], sizes = [96, 16], strides = [1, 1]} : vector<96x32xf32> to vector<96x16xf32>
    %cst_8 = arith.constant dense<0.000000e+00> : vector<96x8xf32>
    %9 = tpu.matmul %8, %0, %cst_8 {dimension_numbers = #tpu.dot_dimension_numbers<[1], [1], [0], [0], [0, 0, 1, 0], [], []>} : vector<96x16xf32>, vector<8x16xf32>, vector<96x8xf32> -> vector<96x8xf32>
    %10 = vector.broadcast %2 : vector<96x1xf32> to vector<96x8xf32>
    %11 = arith.addf %9, %10 : vector<96x8xf32>
    %12 = vector.shape_cast %11 : vector<96x8xf32> to vector<12x8x8xf32>
    %13 = vector.extract_strided_slice %12 {offsets = [0, 0, 0], sizes = [4, 8, 8], strides = [1, 1, 1]} : vector<12x8x8xf32> to vector<4x8x8xf32>
    %14 = vector.extract_strided_slice %12 {offsets = [4, 0, 0], sizes = [4, 8, 8], strides = [1, 1, 1]} : vector<12x8x8xf32> to vector<4x8x8xf32>
    %15 = vector.extract_strided_slice %12 {offsets = [8, 0, 0], sizes = [4, 8, 8], strides = [1, 1, 1]} : vector<12x8x8xf32> to vector<4x8x8xf32>
    %cst_9 = arith.constant dense<0.000000e+00> : vector<4x8x8xf32>
    %16 = tpu.matmul %13, %14, %cst_9 {dimension_numbers = #tpu.dot_dimension_numbers<[1], [1], [2], [2], [0, 0, 0, 2, 1, 2], [0], [0]>} : vector<4x8x8xf32>, vector<4x8x8xf32>, vector<4x8x8xf32> -> vector<4x8x8xf32>
    %cst_10 = arith.constant 0.353553385 : f32
    %17 = vector.broadcast %cst_10 : f32 to vector<4x8x8xf32>
    %18 = arith.mulf %16, %17 : vector<4x8x8xf32>
    %19 = vector.shape_cast %18 : vector<4x8x8xf32> to vector<32x8xf32>
    %cst_11 = arith.constant dense<0xFF800000> : vector<32xf32>
    %20 = vector.multi_reduction <maximumf>, %19, %cst_11 [1] : vector<32x8xf32> to vector<32xf32>
    %21 = vector.shape_cast %20 : vector<32xf32> to vector<32x1xf32>
    %22 = vector.broadcast %21 : vector<32x1xf32> to vector<32x8xf32>
    %23 = arith.subf %19, %22 : vector<32x8xf32>
    %24 = math.exp %23 : vector<32x8xf32>
    %cst_12 = arith.constant dense<0.000000e+00> : vector<32xf32>
    %25 = vector.multi_reduction <add>, %24, %cst_12 [1] : vector<32x8xf32> to vector<32xf32>
    %26 = vector.shape_cast %25 : vector<32xf32> to vector<32x1xf32>
    %27 = tpu.reciprocal %26 {approx = true} : vector<32x1xf32> -> vector<32x1xf32>
    %28 = arith.mulf %26, %27 : vector<32x1xf32>
    %cst_13 = arith.constant 2.000000e+00 : f32
    %29 = vector.broadcast %cst_13 : f32 to vector<32x1xf32>
    %30 = arith.subf %29, %28 : vector<32x1xf32>
    %31 = arith.mulf %27, %30 : vector<32x1xf32>
    %32 = vector.broadcast %31 : vector<32x1xf32> to vector<32x8xf32>
    %33 = arith.mulf %24, %32 : vector<32x8xf32>
    %34 = vector.shape_cast %33 : vector<32x8xf32> to vector<4x8x8xf32>
    %cst_14 = arith.constant dense<0.000000e+00> : vector<4x8x8xf32>
    %35 = tpu.matmul %15, %34, %cst_14 {dimension_numbers = #tpu.dot_dimension_numbers<[2], [2], [1], [1], [0, 0, 0, 1, 1, 1], [0], [0]>} : vector<4x8x8xf32>, vector<4x8x8xf32>, vector<4x8x8xf32> -> vector<4x8x8xf32>
    %36 = vector.shape_cast %35 : vector<4x8x8xf32> to vector<32x8xf32>
    %37 = vector.extract_strided_slice %7 {offsets = [0, 16], sizes = [96, 16], strides = [1, 1]} : vector<96x32xf32> to vector<96x16xf32>
    %cst_15 = arith.constant dense<0.000000e+00> : vector<96x8xf32>
    %38 = tpu.matmul %37, %0, %cst_15 {dimension_numbers = #tpu.dot_dimension_numbers<[1], [1], [0], [0], [0, 0, 1, 0], [], []>} : vector<96x16xf32>, vector<8x16xf32>, vector<96x8xf32> -> vector<96x8xf32>
    %39 = vector.broadcast %2 : vector<96x1xf32> to vector<96x8xf32>
    %40 = arith.addf %38, %39 : vector<96x8xf32>
    %41 = vector.shape_cast %40 : vector<96x8xf32> to vector<12x8x8xf32>
    %42 = vector.extract_strided_slice %41 {offsets = [0, 0, 0], sizes = [4, 8, 8], strides = [1, 1, 1]} : vector<12x8x8xf32> to vector<4x8x8xf32>
    %43 = vector.extract_strided_slice %41 {offsets = [4, 0, 0], sizes = [4, 8, 8], strides = [1, 1, 1]} : vector<12x8x8xf32> to vector<4x8x8xf32>
    %44 = vector.extract_strided_slice %41 {offsets = [8, 0, 0], sizes = [4, 8, 8], strides = [1, 1, 1]} : vector<12x8x8xf32> to vector<4x8x8xf32>
    %cst_16 = arith.constant dense<0.000000e+00> : vector<4x8x8xf32>
    %45 = tpu.matmul %42, %43, %cst_16 {dimension_numbers = #tpu.dot_dimension_numbers<[1], [1], [2], [2], [0, 0, 0, 2, 1, 2], [0], [0]>} : vector<4x8x8xf32>, vector<4x8x8xf32>, vector<4x8x8xf32> -> vector<4x8x8xf32>
    %cst_17 = arith.constant 0.353553385 : f32
    %46 = vector.broadcast %cst_17 : f32 to vector<4x8x8xf32>
    %47 = arith.mulf %45, %46 : vector<4x8x8xf32>
    %48 = vector.shape_cast %47 : vector<4x8x8xf32> to vector<32x8xf32>
    %cst_18 = arith.constant dense<0xFF800000> : vector<32xf32>
    %49 = vector.multi_reduction <maximumf>, %48, %cst_18 [1] : vector<32x8xf32> to vector<32xf32>
    %50 = vector.shape_cast %49 : vector<32xf32> to vector<32x1xf32>
    %51 = vector.broadcast %50 : vector<32x1xf32> to vector<32x8xf32>
    %52 = arith.subf %48, %51 : vector<32x8xf32>
    %53 = math.exp %52 : vector<32x8xf32>
    %cst_19 = arith.constant dense<0.000000e+00> : vector<32xf32>
    %54 = vector.multi_reduction <add>, %53, %cst_19 [1] : vector<32x8xf32> to vector<32xf32>
    %55 = vector.shape_cast %54 : vector<32xf32> to vector<32x1xf32>
    %56 = tpu.reciprocal %55 {approx = true} : vector<32x1xf32> -> vector<32x1xf32>
    %57 = arith.mulf %55, %56 : vector<32x1xf32>
    %cst_20 = arith.constant 2.000000e+00 : f32
    %58 = vector.broadcast %cst_20 : f32 to vector<32x1xf32>
    %59 = arith.subf %58, %57 : vector<32x1xf32>
    %60 = arith.mulf %56, %59 : vector<32x1xf32>
    %61 = vector.broadcast %60 : vector<32x1xf32> to vector<32x8xf32>
    %62 = arith.mulf %53, %61 : vector<32x8xf32>
    %63 = vector.shape_cast %62 : vector<32x8xf32> to vector<4x8x8xf32>
    %cst_21 = arith.constant dense<0.000000e+00> : vector<4x8x8xf32>
    %64 = tpu.matmul %44, %63, %cst_21 {dimension_numbers = #tpu.dot_dimension_numbers<[2], [2], [1], [1], [0, 0, 0, 1, 1, 1], [0], [0]>} : vector<4x8x8xf32>, vector<4x8x8xf32>, vector<4x8x8xf32> -> vector<4x8x8xf32>
    %65 = vector.shape_cast %64 : vector<4x8x8xf32> to vector<32x8xf32>
    %66 = tpu.concatenate %36, %65 in 1 : vector<32x8xf32>, vector<32x8xf32> -> vector<32x16xf32>
    %cst_22 = arith.constant dense<0.000000e+00> : vector<32x16xf32>
    %67 = tpu.matmul %3, %66, %cst_22 {dimension_numbers = #tpu.dot_dimension_numbers<[1], [0], [0], [1], [0, 0, 1, 1], [], []>} : vector<32x32xf32>, vector<32x16xf32>, vector<32x16xf32> -> vector<32x16xf32>
    %68 = vector.extract_strided_slice %67 {offsets = [0, 0], sizes = [32, 8], strides = [1, 1]} : vector<32x16xf32> to vector<32x8xf32>
    %cst_23 = arith.constant dense<0.000000e+00> : vector<16x32xf32>
    %69 = tpu.matmul %0, %68, %cst_23 {dimension_numbers = #tpu.dot_dimension_numbers<[0], [1], [1], [0], [0, 1, 1, 0], [], []>} : vector<8x16xf32>, vector<32x8xf32>, vector<16x32xf32> -> vector<16x32xf32>
    %70 = vector.broadcast %4 : vector<1x32xf32> to vector<16x32xf32>
    %71 = arith.addf %69, %70 : vector<16x32xf32>
    %72 = vector.extract_strided_slice %67 {offsets = [0, 8], sizes = [32, 8], strides = [1, 1]} : vector<32x16xf32> to vector<32x8xf32>
    %cst_24 = arith.constant dense<0.000000e+00> : vector<16x32xf32>
    %73 = tpu.matmul %0, %72, %cst_24 {dimension_numbers = #tpu.dot_dimension_numbers<[0], [1], [1], [0], [0, 1, 1, 0], [], []>} : vector<8x16xf32>, vector<32x8xf32>, vector<16x32xf32> -> vector<16x32xf32>
    %74 = vector.broadcast %4 : vector<1x32xf32> to vector<16x32xf32>
    %75 = arith.addf %73, %74 : vector<16x32xf32>
    %76 = vector.shape_cast %71 : vector<16x32xf32> to vector<1x16x32xf32>
    %77 = vector.shape_cast %75 : vector<16x32xf32> to vector<1x16x32xf32>
    %78 = tpu.concatenate %76, %77 in 0 : vector<1x16x32xf32>, vector<1x16x32xf32> -> vector<2x16x32xf32>
    %c0_25 = arith.constant 0 : index
    %c0_26 = arith.constant 0 : index
    %c0_27 = arith.constant 0 : index
    %79 = vector.load %arg3[%c0_25, %c0_26, %c0_27] : memref<2x16x32xf32, #tpu.memory_space<vmem>>, vector<2x16x32xf32>
    tpu.vector_store %arg3[%c0_25, %c0_26, %c0_27], %78 {strides = array<i32>} : memref<2x16x32xf32, #tpu.memory_space<vmem>>, vector<2x16x32xf32>,
    return
  }
  func.func @transform_0(%arg0: i32) -> (i32, i32, i32) {
    %c0_i32 = arith.constant 0 : i32
    %c0_i32_0 = arith.constant 0 : i32
    %c0_i32_1 = arith.constant 0 : i32
    return %arg0, %c0_i32, %c0_i32_0 : i32, i32, i32
  }
  func.func @transform_1(%arg0: i32) -> (i32, i32) {
    %c0_i32 = arith.constant 0 : i32
    %c0_i32_0 = arith.constant 0 : i32
    %c0_i32_1 = arith.constant 0 : i32
    return %c0_i32, %c0_i32_0 : i32, i32
  }
  func.func @transform_2(%arg0: i32) -> (i32, i32, i32) {
    %c0_i32 = arith.constant 0 : i32
    %c0_i32_0 = arith.constant 0 : i32
    %c0_i32_1 = arith.constant 0 : i32
    return %arg0, %c0_i32, %c0_i32_0 : i32, i32, i32
  }
}

</mosaic_0001>

<bundles_post_ra>
// kernel: tpu_custom_call.1
= control target key start
LH: loop header
LB: loop body
LE: loop exit
PB: predicated region body
PF: predicated region fallthrough
CT: control target
= control target key end

     0   :  { %7 = vsyncpa [#allocation3], 0  ;;  %s3510_s0 = inlined_call_operand.hbm [shape: f32[2,16,32], index: 0, kind: input, shape index: {}]   ;;  %s3511_s1 = inlined_call_operand.hbm [shape: f32[144,128], index: 1, kind: input, shape index: {}]   ;;  %s3512_s2 = inlined_call_operand.hbm [shape: f32[2,16,32], index: 2, kind: output, shape index: {}]  }
   0x1   :  { %8 = vsyncpa [#allocation6], 0 }
   0x2   :  { %9 = vsyncpa [#allocation4], 0  ;;  %s3089_s9 = smov [#allocation2]   ;;  %s3017_s13 = scalar_lea.hbm %s3510_s0, 512 }
   0x3   :  { %s15_s10 = sshll.u32 %s3089_s9, 4  ;;  %p3018_p0 = scmp.ne.s32.totalorder %s3510_s0, %s3017_s13  ;;  %s16_s10 = int_to_ptr.vmem [resolvable:$true] %s15_s10 }
   0x4   :  { %p3021_p1 = scmp.lt.u32.totalorder %s3017_s13, %s3510_s0 }
   0x6   :  { %p3023_p2 = pnand %p3021_p1, %p3018_p0 }
   0x8   :  { %3026 = shalt.err (!%p3023_p2)
}
   0x9   :  { %s3027_s18 = scalar_lea.vmem %s16_s10, 512  ;;  %p3032_p4 = scmp.lt.s32.totalorder %s16_s10, %s16_s10 }
   0xa   :  { %p3028_p3 = scmp.ne.s32.totalorder %s16_s10, %s3027_s18  ;;  %p3033_p5 = scmp.lt.s32.totalorder %s3027_s18, %s3027_s18 }
   0xc   :  { %p3034_p6 = por %p3033_p5, %p3032_p4 }
   0xe   :  { %p3035_p7 = pnand %p3034_p6, %p3028_p3 }
  0x10   :  { %3038 = shalt.err (!%p3035_p7)
}
  0x11   :  { %s3090_s19 = smov 128   ;;  %s3091_s20 = smov 8  }
  0x12   :  { %21 = dma.hbm_to_vmem [thread:$0]  %s3510_s0, 512, %s16_s10, [#allocation3], %s3090_s19, %s3090_s19, %s3091_s20  }
  0x13   :  { %s3092_s23 = smov [#allocation5]   ;;  %s3039_s27 = scalar_lea.hbm %s3511_s1, 2304 }
  0x14   :  { %s27_s24 = sshll.u32 %s3092_s23, 4  ;;  %p3040_p8 = scmp.ne.s32.totalorder %s3511_s1, %s3039_s27  ;;  %s28_s24 = int_to_ptr.vmem [resolvable:$true] %s27_s24 }
  0x15   :  { %p3043_p9 = scmp.lt.u32.totalorder %s3039_s27, %s3511_s1 }
  0x17   :  { %p3045_p10 = pnand %p3043_p9, %p3040_p8 }
  0x19   :  { %3048 = shalt.err (!%p3045_p10)
}
  0x1a   :  { %s3049_s4 = scalar_lea.vmem %s28_s24, 2304  ;;  %p3054_p12 = scmp.lt.s32.totalorder %s28_s24, %s28_s24 }
  0x1b   :  { %p3050_p11 = scmp.ne.s32.totalorder %s28_s24, %s3049_s4  ;;  %p3055_p13 = scmp.lt.s32.totalorder %s3049_s4, %s3049_s4 }
  0x1d   :  { %p3056_p0 = por %p3055_p13, %p3054_p12 }
  0x1f   :  { %p3057_p1 = pnand %p3056_p0, %p3050_p11 }
  0x21   :  { %3060 = shalt.err (!%p3057_p1)
}
  0x22   :  { %33 = dma.hbm_to_vmem [thread:$0]  %s3511_s1, 2304, %s28_s24, [#allocation6], %s3090_s19, %s3090_s19, %s3091_s20  }
  0x23   :  { %3083 = dma.done.wait [#allocation3], 512  }
  0x24   :  { %3084 = vsyncadd [#allocation3], 4294966784 }
  0x25   :  { %3085 = dma.done.wait [#allocation6], 2304  }
  0x26   :  { %3086 = vsyncadd [#allocation6], 4294964992  ;;  %vm62_vm0 = vcmask 261120   ;;  %v58_v1 = vld [vmem:[#allocation2] sm:$0xff]  ;;  %v59_v2 = vld [vmem:[#allocation2 + $0x8] sm:$0xff]  ;;  %vm284_vm2 = vcmask 130048  }
  0x27   :  { %vm3146_vm1 = vmpackc.low %vm62_vm0, %vm62_vm0  ;;  %v60_v3 = vld [vmem:[#allocation2 + $0x10] sm:$0xff]  ;;  %v2909_v4 = vpack.c.bf16 %v59_v2, %v58_v1  ;;  %v61_v5 = vld [vmem:[#allocation2 + $0x18] sm:$0xff]  ;;  %v3093_v17 = vmov 32   ;;  %v3094_v29 = vmov 0.0   ;;  %vm3095_vm3 = vmmov 0   ;;  %s3096_s1 = smov 112  }
  0x28   :  { %v41_v6 = vld [vmem:[#allocation5 + $0x8] sm:$0xff]  ;;  %v2915_v7 = vpack.c.bf16 %v61_v5, %v60_v3  ;;  %v3155_v8 = vld [vmem:[#allocation5] sm:$0xff]  ;;  %v42_v9 = vld [vmem:[#allocation5 + $0x10] sm:$0xff]  ;;  %2963 = vset.pattern.permute.xlu0 %v3093_v17  ;;  %2964 = vset.pattern.permute.xlu1 %v3093_v17  ;;  %vm481_vm4 = vcmask 64512   ;;  %s3097_s6 = smov 120   ;;  %s3098_s7 = smov [#allocation7]  }
  0x29   :  { %2735 = vmatprep.mubr.msk.f32.mxu0 %vm62_vm0, %v41_v6  ;;  %2911 = vmatprep.subr.msk.bf16.mxu0 %vm3146_vm1, %v2909_v4  ;;  %v43_v10 = vld [vmem:[#allocation5 + $0x18] sm:$0xff]  ;;  %v3167_v11 = vld [vmem:[#allocation5 + $0x20] sm:$0xff]  ;;  %v45_v12 = vld [vmem:[#allocation5 + $0x28] sm:$0xff]  ;;  %s2537_s8 = sshll.u32 %s3098_s7, 4  ;;  %s2538_s8 = int_to_ptr.vmem [resolvable:$true] %s2537_s8 }
  0x2a   :  { %2914 = vmatpush3.bf16.xpose.msk.msra.mxu0 %vm3146_vm1, %v2909_v4  ;;  %2753 = vmatprep.subr.msk.mxu1 %vm284_vm2, %v3155_v8  ;;  %v46_v13 = vld [vmem:[#allocation5 + $0x30] sm:$0xff]  ;;  %v47_v14 = vld [vmem:[#allocation5 + $0x38] sm:$0xff]  ;;  %v3174_v15 = vld [vmem:[#allocation5 + $0x40] sm:$0xff]  ;;  %s3061_s9 = scalar_lea.vmem %s2538_s8, 512  ;;  %p3066_p3 = scmp.lt.s32.totalorder %s2538_s8, %s2538_s8 }
  0x2b   :  { %2917 = vmatprep.subr.msk.bf16.mxu0 %vm3146_vm1, %v2915_v7  ;;  %2754 = vmatpush3.xpose.msk.msra.mxu1 %vm284_vm2, %v3155_v8  ;;  %v3178_v16 = vld [vmem:[#allocation5 + $0x48] sm:$0xff]  ;;  %v3180_v18 = vld [vmem:[#allocation5 + $0x50] sm:$0xff]  ;;  %v3182_v19 = vld [vmem:[#allocation5 + $0x58] sm:$0xff]  ;;  %p3062_p2 = scmp.ne.s32.totalorder %s2538_s8, %s3061_s9  ;;  %p3067_p4 = scmp.lt.s32.totalorder %s3061_s9, %s3061_s9 }
  0x2c   :  { %237 = vperm.xlu0 %2963, %v41_v6   ;;  %245 = vperm.xlu1 %2964, %v43_v10   ;;  %v3190_v20 = vld [vmem:[#allocation5 + $0x60] sm:$0xff]  ;;  %vm3467_vm5 = vmpackc.low %vm481_vm4, %vm481_vm4 }
  0x2d   :  { %2773 = vmatprep.subr.mxu1 %v3094_v29  ;;  %p3068_p5 = por %p3067_p4, %p3066_p3 }
  0x2f   :  { %p3069_p6 = pnand %p3068_p5, %p3062_p2 }
  0x30   :  { %241 = vperm.xlu0 %2963, %v42_v9   ;;  %253 = vperm.xlu1 %2964, %v45_v12  }
  0x32   :  { %2920 = vmatpush3.bf16.xpose.msk.msra.mxu0 %vm3146_vm1, %v2915_v7 }
  0x33   :  { %2788 = vmatprep.subr.mxu0 %v3094_v29 }
  0x34   :  { %257 = vperm.xlu0 %2963, %v46_v13   ;;  %261 = vperm.xlu1 %2964, %v47_v14  }
  0x39   :  { %2736 = vmatmul.mubr.msk.f32.vlgmr.msra.gmra.mrb[0].mxu0 %vm62_vm0, %v42_v9 }
  0x3a   :  { %2738 = vmatprep.mubr.msk.f32.mxu0 %vm62_vm0, %v43_v10 }
  0x3d   :  { %2739 = vmatmul.mubr.msk.f32.gmra.mrb[2].mxu0 %vm62_vm0, %v3167_v11 }
  0x3e   :  { %2741 = vmatprep.mubr.msk.f32.mxu0 %vm62_vm0, %v45_v12 }
  0x41   :  { %2742 = vmatmul.mubr.msk.f32.gmra.mrb[4].mxu0 %vm62_vm0, %v46_v13 }
  0x42   :  { %2744 = vmatprep.mubr.msk.f32.mxu0 %vm62_vm0, %v47_v14 }
  0x45   :  { %2745 = vmatmul.mubr.msk.f32.gmra.mrb[6].mxu0 %vm62_vm0, %v3174_v15 }
  0x46   :  { %2747 = vmatprep.mubr.msk.f32.mxu0 %vm62_vm0, %v3178_v16 }
  0x49   :  { %2748 = vmatmul.mubr.msk.f32.gmra.mrb[8].mxu0 %vm62_vm0, %v3180_v18 }
  0x4a   :  { %2750 = vmatprep.mubr.msk.f32.mxu0 %vm62_vm0, %v3182_v19 }
  0x4d   :  { %2751 = vmatmul.mubr.msk.f32.gmra.mrb[10].mxu0 %vm62_vm0, %v3190_v20 }
  0x4e   :  { %2790 = vmatprep.mubr.msk.f32.mxu0 %vm3095_vm3, %v3094_v29 }
  0xab   :  { %v3248_v34 = vpop.permute.xlu0 %237  ;;  %v3254_v40 = vpop.permute.xlu1 %245 }
  0xaf   :  { %v3250_v35 = vpop.permute.xlu0 %241  ;;  %v3257_v45 = vpop.permute.xlu1 %253 }
  0xb3   :  { %v3263_v50 = vpop.permute.xlu0 %257  ;;  %v3265_v51 = vpop.permute.xlu1 %261 }
 0x10c   :  { %v3194_v21 = vpop.f32.mrb[0].mxu0 }
 0x10d   :  { %v3196_v22 = vpop.f32.mrb[1].mxu0 }
 0x10e   :  { %2755 = vmatprep.mubr.msk.f32.mxu1 %vm284_vm2, %v3196_v22 }
 0x10f   :  { %2756 = vmatmul.mubr.msk.f32.vlgmr.msra.gmra.mrb[0].mxu1 %vm284_vm2, %v3194_v21 }
 0x110   :  { %v3202_v23 = vpop.f32.mrb[2].mxu0 }
 0x111   :  { %v3204_v24 = vpop.f32.mrb[3].mxu0 }
 0x112   :  { %2758 = vmatprep.mubr.msk.f32.mxu1 %vm284_vm2, %v3204_v24 }
 0x113   :  { %2759 = vmatmul.mubr.msk.f32.gmra.mrb[2].mxu1 %vm284_vm2, %v3202_v23 }
 0x114   :  { %v3210_v25 = vpop.f32.mrb[4].mxu0 }
 0x115   :  { %v3212_v26 = vpop.f32.mrb[5].mxu0 }
 0x116   :  { %2761 = vmatprep.mubr.msk.f32.mxu1 %vm284_vm2, %v3212_v26 }
 0x117   :  { %2762 = vmatmul.mubr.msk.f32.gmra.mrb[4].mxu1 %vm284_vm2, %v3210_v25 }
 0x118   :  { %v3218_v27 = vpop.f32.mrb[6].mxu0 }
 0x119   :  { %v3220_v28 = vpop.f32.mrb[7].mxu0 }
 0x11a   :  { %2764 = vmatprep.mubr.msk.f32.mxu1 %vm284_vm2, %v3220_v28 }
 0x11b   :  { %2765 = vmatmul.mubr.msk.f32.gmra.mrb[6].mxu1 %vm284_vm2, %v3218_v27 }
 0x11c   :  { %v3228_v30 = vpop.f32.mrb[8].mxu0 }
 0x11d   :  { %v3230_v31 = vpop.f32.mrb[9].mxu0 }
 0x11e   :  { %2767 = vmatprep.mubr.msk.f32.mxu1 %vm284_vm2, %v3230_v31 }
 0x11f   :  { %2768 = vmatmul.mubr.msk.f32.gmra.mrb[8].mxu1 %vm284_vm2, %v3228_v30 }
 0x120   :  { %v3236_v32 = vpop.f32.mrb[10].mxu0 }
 0x121   :  { %v3240_v33 = vpop.f32.mrb[11].mxu0 }
 0x122   :  { %2770 = vmatprep.mubr.msk.f32.mxu1 %vm284_vm2, %v3240_v33 }
 0x123   :  { %2771 = vmatmul.mubr.msk.f32.gmra.mrb[10].mxu1 %vm284_vm2, %v3236_v32 }
 0x124   :  { %2775 = vmatprep.mubr.msk.f32.mxu1 %vm3095_vm3, %v3094_v29 }
 0x1e2   :  { %v2757_v36 = vpop.f32.mrb[0].mxu1 }
 0x1e3   :  { %v396_v37 = vadd.f32 %v2757_v36, %v3250_v35  ;;  %v390_v38 = vpop.f32.mrb[1].mxu1 }
 0x1e4   :  { %v391_v39 = vadd.f32 %v390_v38, %v3248_v34 }
 0x1e5   :  { %555 = vxpose.xlu1.b32.start.end [1/1] (short) (narrow) %v396_v37, 8 }
 0x1e6   :  { %v2760_v41 = vpop.f32.mrb[2].mxu1  ;;  %449 = vxpose.xlu0.b32.start.end [1/1] (short) (narrow) %v391_v39, 8 }
 0x1e7   :  { %v400_v42 = vpop.f32.mrb[3].mxu1 }
 0x1e8   :  { %v401_v43 = vadd.f32 %v400_v42, %v3254_v40 }
 0x1ea   :  { %v2763_v44 = vpop.f32.mrb[4].mxu1  ;;  %660 = vxpose.xlu0.b32.start.end [1/1] (short) (narrow) %v401_v43, 8 }
 0x1eb   :  { %v410_v46 = vpop.f32.mrb[5].mxu1  ;;  %v416_v52 = vadd.f32 %v2763_v44, %v3263_v50 }
 0x1ec   :  { %v411_v47 = vadd.f32 %v410_v46, %v3257_v45 }
 0x1ee   :  { %v2766_v48 = vpop.f32.mrb[6].mxu1  ;;  %2774 = vmatpush3.msra.mxu1 %v411_v47 }
 0x1ef   :  { %v420_v49 = vpop.f32.mrb[7].mxu1  ;;  %2778 = vmatprep.subr.mxu1 %v3094_v29 }
 0x1f0   :  { %v421_v55 = vadd.f32 %v420_v49, %v3265_v51 }
 0x1f2   :  { %v3287_v61 = vpop.f32.mrb[8].mxu1 }
 0x1f3   :  { %v3289_v62 = vpop.f32.mrb[9].mxu1 }
 0x1f6   :  { %v3291_v63 = vpop.f32.mrb[10].mxu1 }
 0x1f7   :  { %v3293_v0 = vpop.f32.mrb[11].mxu1 }
 0x203   :  { %265 = vperm.xlu1 %2964, %v3174_v15  }
 0x213   :  { %249 = vperm.xlu0 %2963, %v3167_v11  }
 0x265   :  { %v571_v54 = vpop.trf.xlu1 }
 0x266   :  { %v465_v53 = vpop.trf.xlu0 }
 0x267   :  { %2776 = vmatmul.mubr.msk.f32.vlgmr.msra.gmra.mrb[12].mxu1 %vm481_vm4, %v465_v53 }
 0x268   :  { %2779 = vmatpush3.msra.mxu1 %v416_v52  ;;  %2780 = vmatprep.mubr.msk.f32.mxu1 %vm3095_vm3, %v3094_v29 }
 0x269   :  { %2783 = vmatprep.subr.mxu1 %v3094_v29 }
 0x26a   :  { %v676_v56 = vpop.trf.xlu0 }
 0x26b   :  { %2781 = vmatmul.mubr.msk.f32.vlgmr.msra.gmra.mrb[14].mxu1 %vm481_vm4, %v571_v54 }
 0x26c   :  { %2784 = vmatpush3.msra.mxu1 %v421_v55  ;;  %2785 = vmatprep.mubr.msk.f32.mxu1 %vm3095_vm3, %v3094_v29 }
 0x26d   :  { %2793 = vmatprep.subr.mxu1 %v3094_v29 }
 0x26f   :  { %2786 = vmatmul.mubr.msk.f32.vlgmr.msra.gmra.mrb[16].mxu1 %vm481_vm4, %v676_v56 }
 0x270   :  { %2795 = vmatprep.mubr.msk.f32.mxu1 %vm3095_vm3, %v3094_v29 }
 0x282   :  { %v3280_v57 = vpop.permute.xlu1 %265 }
 0x283   :  { %v426_v58 = vadd.f32 %v2766_v48, %v3280_v57 }
 0x285   :  { %2789 = vmatpush3.msra.mxu0 %v426_v58 }
 0x286   :  { %2798 = vmatprep.subr.mxu0 %v3094_v29 }
 0x292   :  { %v3284_v59 = vpop.permute.xlu0 %249 }
 0x293   :  { %v406_v60 = vadd.f32 %v2760_v41, %v3284_v59 }
 0x295   :  { %765 = vxpose.xlu0.b32.start.end [1/1] (short) (narrow) %v406_v60, 8 }
 0x315   :  { %v781_v1 = vpop.trf.xlu0 }
 0x316   :  { %2791 = vmatmul.mubr.msk.f32.vlgmr.msra.gmra.mrb[12].mxu0 %vm481_vm4, %v781_v1 }
 0x317   :  { %2800 = vmatprep.mubr.msk.f32.mxu0 %vm3095_vm3, %v3094_v29 }
 0x33a   :  { %v551_v2 = vpop.f32.mrb[12].mxu1 }
 0x33b   :  { %v870_v3 = vmul.f32 0.35355338, %v551_v2  ;;  %v2777_v4 = vpop.f32.mrb[13].mxu1 }
 0x33d   :  { %v874_v5 = vsel %vm481_vm4, %v870_v3, -inf }
 0x33e   :  { %875 = vmax.xlane.f32.xlu1 %v874_v5  ;;  %v656_v6 = vpop.f32.mrb[14].mxu1 }
 0x33f   :  { %v2782_v7 = vpop.f32.mrb[15].mxu1  ;;  %v871_v44 = vmul.f32 0.35355338, %v656_v6 }
 0x342   :  { %v761_v9 = vpop.f32.mrb[16].mxu1 }
 0x343   :  { %v872_v10 = vmul.f32 0.35355338, %v761_v9  ;;  %v2787_v11 = vpop.f32.mrb[17].mxu1 }
 0x345   :  { %v880_v12 = vsel %vm481_vm4, %v872_v10, -inf }
 0x346   :  { %881 = vmax.xlane.f32.xlu0 %v880_v12 }
 0x34f   :  { %269 = vperm.xlu1 %2964, %v3178_v16  }
 0x353   :  { %277 = vperm.xlu1 %2964, %v3182_v19  }
 0x35c   :  { %1242 = vrot.lane.b32.xlu0 %v3212_v26, %s3096_s1 }
 0x3cb   :  { %v876_v13 = vpop.xlane.xlu1 %875 }
 0x3cc   :  { %v886_v14 = vsub.f32 %v870_v3, %v876_v13 }
 0x3ce   :  { %v890_v15 = vmul.f32 1.442695, %v886_v14 }
 0x3d0   :  { %2985 = vpow2.f32 %v890_v15 }
 0x3d3   :  { %v882_v17 = vpop.xlane.xlu0 %881 }
 0x3d4   :  { %v888_v36 = vsub.f32 %v872_v10, %v882_v17 }
 0x3d6   :  { %v894_v37 = vmul.f32 1.442695, %v888_v36 }
 0x3d7   :  { %v1243_v49 = vpop.permute.xlu0 %1242 }
 0x3d8   :  { %2987 = vpow2.f32 %v894_v37 }
 0x3da   :  { %v2986_v38 = vpop.eup %2985 }
 0x3db   :  { %v898_v39 = vsel %vm481_vm4, %v2986_v38, 0.0 }
 0x3dc   :  { %899 = vadd.xlane.f32.xlu1 %v898_v39 }
 0x3e2   :  { %v2988_v41 = vpop.eup %2987 }
 0x3e3   :  { %v904_v16 = vsel %vm481_vm4, %v2988_v41, 0.0 }
 0x3e4   :  { %905 = vadd.xlane.f32.xlu1 %v904_v16 }
 0x3e9   :  { %v866_v19 = vpop.f32.mrb[12].mxu0 }
 0x3ea   :  { %v873_v42 = vmul.f32 0.35355338, %v866_v19  ;;  %v2792_v43 = vpop.f32.mrb[13].mxu0 }
 0x3ec   :  { %v883_v26 = vsel %vm481_vm4, %v873_v42, -inf }
 0x3ed   :  { %884 = vmax.xlane.f32.xlu0 %v883_v26 }
 0x3f5   :  { %1234 = vrot.lane.b32.xlu1 %v3196_v22, %s3096_s1  ;;  %v877_v22 = vsel %vm481_vm4, %v871_v44, -inf }
 0x3f9   :  { %1236 = vrot.lane.b32.xlu1 %v3194_v21, %s3096_s1  ;;  %v3322_v21 = vpop.permute.xlu1 %269 }
 0x3fa   :  { %v431_v1 = vadd.f32 %v3289_v62, %v3322_v21 }
 0x3fd   :  { %1238 = vrot.lane.b32.xlu1 %v3204_v24, %s3096_s1  ;;  %v3324_v46 = vpop.permute.xlu1 %277 }
 0x3fe   :  { %v441_v7 = vadd.f32 %v3293_v0, %v3324_v46 }
 0x401   :  { %1240 = vrot.lane.b32.xlu1 %v3202_v23, %s3096_s1 }
 0x405   :  { %1244 = vrot.lane.b32.xlu1 %v3210_v25, %s3096_s1 }
 0x409   :  { %1246 = vrot.lane.b32.xlu1 %v3220_v28, %s3096_s1 }
 0x40d   :  { %1248 = vrot.lane.b32.xlu1 %v3218_v27, %s3096_s1 }
 0x431   :  { %878 = vmax.xlane.f32.xlu1 %v877_v22 }
 0x469   :  { %v900_v24 = vpop.xlane.xlu1 %899 }
 0x46a   :  { %2989 = vrcp.f32 %v900_v24 }
 0x471   :  { %v906_v23 = vpop.xlane.xlu1 %905 }
 0x472   :  { %2991 = vrcp.f32 %v906_v23 }
 0x474   :  { %v2990_v47 = vpop.eup %2989 }
 0x475   :  { %v914_v25 = vmul.f32 %v2990_v47, %v900_v24  ;;  %v1235_v48 = vpop.permute.xlu1 %1234 }
 0x477   :  { %v918_v28 = vsub.f32 2.0, %v914_v25 }
 0x479   :  { %v922_v52 = vmul.f32 %v2990_v47, %v918_v28  ;;  %v1237_v53 = vpop.permute.xlu1 %1236 }
 0x47a   :  { %v885_v27 = vpop.xlane.xlu0 %884 }
 0x47b   :  { %v926_v54 = vmul.f32 %v2986_v38, %v922_v52  ;;  %v889_v55 = vsub.f32 %v873_v42, %v885_v27 }
 0x47c   :  { %v2992_v56 = vpop.eup %2991 }
 0x47d   :  { %v916_v58 = vmul.f32 %v2992_v56, %v906_v23  ;;  %v896_v60 = vmul.f32 1.442695, %v889_v55  ;;  %2794 = vmatpush3.xpose.msk.msra.mxu1 %vm481_vm4, %v926_v54  ;;  %v1239_v3 = vpop.permute.xlu1 %1238 }
 0x47e   :  { %2803 = vmatprep.subr.mxu1 %v3094_v29 }
 0x47f   :  { %v920_v2 = vsub.f32 2.0, %v916_v58  ;;  %2993 = vpow2.f32 %v896_v60 }
 0x480   :  { %2796 = vmatmul.mubr.msk.f32.vlgmr.msra.gmra.mrb[18].mxu1 %vm481_vm4, %v431_v1 }
 0x481   :  { %v924_v4 = vmul.f32 %v2992_v56, %v920_v2  ;;  %2805 = vmatprep.mubr.msk.f32.mxu1 %vm3095_vm3, %v3094_v29  ;;  %v1241_v6 = vpop.permute.xlu1 %1240 }
 0x483   :  { %v928_v5 = vmul.f32 %v2988_v41, %v924_v4 }
 0x485   :  { %2804 = vmatpush3.xpose.msk.msra.mxu1 %vm481_vm4, %v928_v5  ;;  %v1245_v10 = vpop.permute.xlu1 %1244 }
 0x486   :  { %2813 = vmatprep.subr.msk.mxu1 %vm284_vm2, %v3155_v8 }
 0x488   :  { %2806 = vmatmul.mubr.msk.f32.vlgmr.msra.gmra.mrb[20].mxu1 %vm481_vm4, %v441_v7 }
 0x489   :  { %v2994_v62 = vpop.eup %2993  ;;  %2814 = vmatpush3.xpose.msk.msra.mxu1 %vm284_vm2, %v3155_v8  ;;  %2815 = vmatprep.mubr.msk.f32.mxu1 %vm284_vm2, %v1235_v48  ;;  %v1247_v0 = vpop.permute.xlu1 %1246 }
 0x48a   :  { %v907_v9 = vsel %vm481_vm4, %v2994_v62, 0.0  ;;  %2863 = vmatprep.subr.mxu1 %v3094_v29 }
 0x48b   :  { %908 = vadd.xlane.f32.xlu0 %v907_v9 }
 0x48c   :  { %2816 = vmatmul.mubr.msk.f32.vlgmr.msra.gmra.mrb[22].mxu1 %vm284_vm2, %v1237_v53 }
 0x48d   :  { %2818 = vmatprep.mubr.msk.f32.mxu1 %vm284_vm2, %v1239_v3  ;;  %v1249_v11 = vpop.permute.xlu1 %1248 }
 0x490   :  { %2819 = vmatmul.mubr.msk.f32.gmra.mrb[24].mxu1 %vm284_vm2, %v1241_v6 }
 0x491   :  { %2821 = vmatprep.mubr.msk.f32.mxu1 %vm284_vm2, %v1243_v49 }
 0x494   :  { %2822 = vmatmul.mubr.msk.f32.gmra.mrb[26].mxu1 %vm284_vm2, %v1245_v10 }
 0x495   :  { %2824 = vmatprep.mubr.msk.f32.mxu1 %vm284_vm2, %v1247_v0 }
 0x498   :  { %2825 = vmatmul.mubr.msk.f32.gmra.mrb[28].mxu1 %vm284_vm2, %v1249_v11 }
 0x4a1   :  { %281 = vperm.xlu0 %2963, %v3190_v20  }
 0x4be   :  { %v879_v12 = vpop.xlane.xlu1 %878 }
 0x4bf   :  { %v887_v13 = vsub.f32 %v871_v44, %v879_v12 }
 0x4c1   :  { %v892_v14 = vmul.f32 1.442695, %v887_v13 }
 0x4c3   :  { %2995 = vpow2.f32 %v892_v14 }
 0x4cd   :  { %v2996_v15 = vpop.eup %2995 }
 0x4ce   :  { %v901_v17 = vsel %vm481_vm4, %v2996_v15, 0.0 }
 0x4cf   :  { %902 = vadd.xlane.f32.xlu1 %v901_v17 }
 0x4e0   :  { %273 = vperm.xlu1 %2964, %v3180_v18  }
 0x518   :  { %v909_v38 = vpop.xlane.xlu0 %908 }
 0x519   :  { %2997 = vrcp.f32 %v909_v38 }
 0x520   :  { %v3368_v56 = vpop.permute.xlu0 %281 }
 0x521   :  { %v446_v58 = vadd.f32 %v3291_v63, %v3368_v56 }
 0x523   :  { %v2998_v26 = vpop.eup %2997 }
 0x524   :  { %v917_v23 = vmul.f32 %v2998_v26, %v909_v38 }
 0x553   :  { %v3354_v36 = vpop.f32.mrb[18].mxu1 }
 0x554   :  { %v2797_v37 = vpop.f32.mrb[19].mxu1 }
 0x55b   :  { %v3356_v39 = vpop.f32.mrb[20].mxu1 }
 0x55c   :  { %v2807_v41 = vpop.f32.mrb[21].mxu1  ;;  %v903_v16 = vpop.xlane.xlu1 %902 }
 0x55d   :  { %2999 = vrcp.f32 %v903_v16 }
 0x55f   :  { %v2817_v20 = vpop.f32.mrb[22].mxu1 }
 0x560   :  { %v1354_v19 = vadd.f32 %v2817_v20, %v3250_v35  ;;  %v1348_v42 = vpop.f32.mrb[23].mxu1  ;;  %v921_v35 = vsub.f32 2.0, %v917_v23  ;;  %v3362_v55 = vpop.permute.xlu1 %273 }
 0x561   :  { %v1349_v43 = vadd.f32 %v1348_v42, %v3248_v34 }
 0x562   :  { %1512 = vxpose.xlu0.b32.start.end [1/1] (short) (narrow) %v1354_v19, 8  ;;  %v925_v27 = vmul.f32 %v2998_v26, %v921_v35 }
 0x563   :  { %v2820_v44 = vpop.f32.mrb[24].mxu1  ;;  %1407 = vxpose.xlu1.b32.start.end [1/1] (short) (narrow) %v1349_v43, 8 }
 0x564   :  { %v1364_v18 = vadd.f32 %v2820_v44, %v3284_v59  ;;  %v1358_v22 = vpop.f32.mrb[25].mxu1  ;;  %v929_v59 = vmul.f32 %v2994_v62, %v925_v27 }
 0x565   :  { %v1359_v24 = vadd.f32 %v1358_v22, %v3254_v40  ;;  %v436_v40 = vadd.f32 %v3287_v61, %v3362_v55 }
 0x567   :  { %v3000_v47 = vpop.eup %2999  ;;  %1722 = vxpose.xlu1.b32.start.end [1/1] (short) (narrow) %v1364_v18, 8  ;;  %v2823_v25 = vpop.f32.mrb[26].mxu1  ;;  %1617 = vxpose.xlu0.b32.start.end [1/1] (short) (narrow) %v1359_v24, 8 }
 0x568   :  { %v915_v48 = vmul.f32 %v3000_v47, %v903_v16  ;;  %v1368_v49 = vpop.f32.mrb[27].mxu1 }
 0x569   :  { %v1369_v60 = vadd.f32 %v1368_v49, %v3257_v45  ;;  %v1374_v45 = vadd.f32 %v2823_v25, %v3263_v50 }
 0x56a   :  { %v919_v28 = vsub.f32 2.0, %v915_v48 }
 0x56b   :  { %v2826_v52 = vpop.f32.mrb[28].mxu1 }
 0x56c   :  { %v923_v34 = vmul.f32 %v3000_v47, %v919_v28  ;;  %v1378_v53 = vpop.f32.mrb[29].mxu1 }
 0x56e   :  { %v927_v54 = vmul.f32 %v2996_v15, %v923_v34 }
 0x570   :  { %2799 = vmatpush3.xpose.msk.msra.mxu0 %vm481_vm4, %v927_v54 }
 0x571   :  { %2808 = vmatprep.subr.mxu0 %v3094_v29 }
 0x573   :  { %2801 = vmatmul.mubr.msk.f32.vlgmr.msra.gmra.mrb[14].mxu0 %vm481_vm4, %v436_v40 }
 0x574   :  { %2809 = vmatpush3.xpose.msk.msra.mxu0 %vm481_vm4, %v929_v59  ;;  %2810 = vmatprep.mubr.msk.f32.mxu0 %vm3095_vm3, %v3094_v29 }
 0x575   :  { %2833 = vmatprep.subr.mxu0 %v3094_v29 }
 0x577   :  { %2811 = vmatmul.mubr.msk.f32.vlgmr.msra.gmra.mrb[16].mxu0 %vm481_vm4, %v446_v58 }
 0x578   :  { %2834 = vmatpush3.msra.mxu0 %v1369_v60  ;;  %2835 = vmatprep.mubr.msk.f32.mxu0 %vm3095_vm3, %v3094_v29 }
 0x579   :  { %2838 = vmatprep.subr.mxu0 %v3094_v29 }
 0x585   :  { %1252 = vrot.lane.b32.xlu1 %v3228_v30, %s3096_s1  ;;  %v1379_v30 = vadd.f32 %v1378_v53, %v3265_v51 }
 0x589   :  { %1254 = vrot.lane.b32.xlu1 %v3240_v33, %s3096_s1 }
 0x58d   :  { %1256 = vrot.lane.b32.xlu1 %v3236_v32, %s3096_s1  ;;  %v1384_v32 = vadd.f32 %v2826_v52, %v3280_v57 }
 0x590   :  { %1250 = vrot.lane.b32.xlu0 %v3230_v31, %s3096_s1 }
 0x5e2   :  { %v1528_v63 = vpop.trf.xlu0 }
 0x5e3   :  { %v1423_v61 = vpop.trf.xlu1 }
 0x5e4   :  { %2836 = vmatmul.mubr.msk.f32.vlgmr.msra.gmra.mrb[18].mxu0 %vm481_vm4, %v1423_v61 }
 0x5e5   :  { %2839 = vmatpush3.msra.mxu0 %v1374_v45  ;;  %2840 = vmatprep.mubr.msk.f32.mxu0 %vm3095_vm3, %v3094_v29 }
 0x5e6   :  { %2843 = vmatprep.subr.mxu0 %v3094_v29 }
 0x5e7   :  { %v1633_v31 = vpop.trf.xlu0  ;;  %v1738_v33 = vpop.trf.xlu1 }
 0x5e8   :  { %2841 = vmatmul.mubr.msk.f32.vlgmr.msra.gmra.mrb[20].mxu0 %vm481_vm4, %v1528_v63 }
 0x5e9   :  { %2844 = vmatpush3.msra.mxu0 %v1379_v30  ;;  %2845 = vmatprep.mubr.msk.f32.mxu0 %vm3095_vm3, %v3094_v29 }
 0x5ea   :  { %2848 = vmatprep.subr.mxu0 %v3094_v29 }
 0x5ec   :  { %2846 = vmatmul.mubr.msk.f32.vlgmr.msra.gmra.mrb[22].mxu0 %vm481_vm4, %v1633_v31 }
 0x5ed   :  { %2849 = vmatpush3.msra.mxu0 %v1384_v32  ;;  %2850 = vmatprep.mubr.msk.f32.mxu0 %vm3095_vm3, %v3094_v29 }
 0x5ee   :  { %2853 = vmatprep.subr.mxu0 %v3094_v29 }
 0x5f0   :  { %2851 = vmatmul.mubr.msk.f32.vlgmr.msra.gmra.mrb[24].mxu0 %vm481_vm4, %v1738_v33 }
 0x5f1   :  { %2855 = vmatprep.mubr.msk.f32.mxu0 %vm3095_vm3, %v3094_v29 }
 0x5f7   :  { %v1253_v50 = vpop.permute.xlu1 %1252 }
 0x5fb   :  { %v1255_v51 = vpop.permute.xlu1 %1254 }
 0x5ff   :  { %v1257_v57 = vpop.permute.xlu1 %1256 }
 0x602   :  { %v1251_v1 = vpop.permute.xlu0 %1250 }
 0x603   :  { %2827 = vmatprep.mubr.msk.f32.mxu1 %vm284_vm2, %v1251_v1 }
 0x604   :  { %2828 = vmatmul.mubr.msk.f32.gmra.mrb[30].mxu1 %vm284_vm2, %v1253_v50 }
 0x605   :  { %2830 = vmatprep.mubr.msk.f32.mxu1 %vm284_vm2, %v1255_v51 }
 0x608   :  { %2831 = vmatmul.mubr.msk.f32.gmra.mrb[32].mxu1 %vm284_vm2, %v1257_v57 }
 0x609   :  { %2865 = vmatprep.mubr.msk.f32.mxu1 %vm3095_vm3, %v3094_v29 }
 0x646   :  { %v3414_v2 = vpop.f32.mrb[14].mxu0 }
 0x647   :  { %v2802_v3 = vpop.f32.mrb[15].mxu0 }
 0x64a   :  { %v3416_v4 = vpop.f32.mrb[16].mxu0 }
 0x64b   :  { %v2812_v5 = vpop.f32.mrb[17].mxu0 }
 0x6b7   :  { %v1508_v6 = vpop.f32.mrb[18].mxu0 }
 0x6b8   :  { %v1827_v7 = vmul.f32 0.35355338, %v1508_v6  ;;  %v2837_v62 = vpop.f32.mrb[19].mxu0 }
 0x6ba   :  { %v1831_v9 = vsel %vm481_vm4, %v1827_v7, -inf }
 0x6bb   :  { %1832 = vmax.xlane.f32.xlu0 %v1831_v9  ;;  %v1613_v10 = vpop.f32.mrb[20].mxu0 }
 0x6bc   :  { %v1828_v0 = vmul.f32 0.35355338, %v1613_v10  ;;  %v2842_v11 = vpop.f32.mrb[21].mxu0 }
 0x6be   :  { %v1834_v12 = vsel %vm481_vm4, %v1828_v0, -inf }
 0x6bf   :  { %1835 = vmax.xlane.f32.xlu1 %v1834_v12  ;;  %v1718_v13 = vpop.f32.mrb[22].mxu0 }
 0x6c0   :  { %v1829_v14 = vmul.f32 0.35355338, %v1718_v13  ;;  %v2847_v15 = vpop.f32.mrb[23].mxu0 }
 0x6c2   :  { %v1837_v17 = vsel %vm481_vm4, %v1829_v14, -inf }
 0x6c3   :  { %1838 = vmax.xlane.f32.xlu0 %v1837_v17  ;;  %v1823_v37 = vpop.f32.mrb[24].mxu0 }
 0x6c4   :  { %v1830_v38 = vmul.f32 0.35355338, %v1823_v37  ;;  %v2852_v41 = vpop.f32.mrb[25].mxu0 }
 0x6c6   :  { %v1840_v16 = vsel %vm481_vm4, %v1830_v38, -inf }
 0x6c7   :  { %1841 = vmax.xlane.f32.xlu0 %v1840_v16 }
 0x6d7   :  { %v2829_v20 = vpop.f32.mrb[30].mxu1 }
 0x6d8   :  { %v1388_v19 = vpop.f32.mrb[31].mxu1  ;;  %v1394_v12 = vadd.f32 %v2829_v20, %v3362_v55 }
 0x6db   :  { %v3422_v42 = vpop.f32.mrb[32].mxu1 }
 0x6dc   :  { %v3424_v43 = vpop.f32.mrb[33].mxu1  ;;  %v1404_v55 = vadd.f32 %v3422_v42, %v3368_v56 }
 0x6dd   :  { %v1399_v15 = vadd.f32 %v3424_v43, %v3324_v46 }
 0x748   :  { %v1833_v26 = vpop.xlane.xlu0 %1832 }
 0x749   :  { %v1843_v44 = vsub.f32 %v1827_v7, %v1833_v26  ;;  %v1389_v7 = vadd.f32 %v1388_v19, %v3322_v21  ;;  %v53_v19 = vld [vmem:[#allocation5 + $0x68] sm:$0xff] }
 0x74b   :  { %v1847_v18 = vmul.f32 1.442695, %v1843_v44 }
 0x74c   :  { %v1836_v22 = vpop.xlane.xlu1 %1835 }
 0x74d   :  { %3001 = vpow2.f32 %v1847_v18  ;;  %v1844_v24 = vsub.f32 %v1828_v0, %v1836_v22 }
 0x74f   :  { %v1849_v23 = vmul.f32 1.442695, %v1844_v24 }
 0x750   :  { %v1839_v47 = vpop.xlane.xlu0 %1838 }
 0x751   :  { %3003 = vpow2.f32 %v1849_v23  ;;  %v1845_v25 = vsub.f32 %v1829_v14, %v1839_v47 }
 0x753   :  { %v1851_v48 = vmul.f32 1.442695, %v1845_v25 }
 0x754   :  { %v1842_v49 = vpop.xlane.xlu0 %1841 }
 0x755   :  { %3005 = vpow2.f32 %v1851_v48  ;;  %v1846_v35 = vsub.f32 %v1830_v38, %v1842_v49 }
 0x757   :  { %v3002_v28 = vpop.eup %3001  ;;  %v1853_v52 = vmul.f32 1.442695, %v1846_v35 }
 0x758   :  { %v1855_v34 = vsel %vm481_vm4, %v3002_v28, 0.0 }
 0x759   :  { %3007 = vpow2.f32 %v1853_v52  ;;  %1856 = vadd.xlane.f32.xlu1 %v1855_v34 }
 0x75b   :  { %v3004_v53 = vpop.eup %3003 }
 0x75c   :  { %v1858_v27 = vsel %vm481_vm4, %v3004_v53, 0.0 }
 0x75d   :  { %1859 = vadd.xlane.f32.xlu0 %v1858_v27 }
 0x75f   :  { %v3006_v54 = vpop.eup %3005 }
 0x760   :  { %v1861_v40 = vsel %vm481_vm4, %v3006_v54, 0.0 }
 0x761   :  { %1862 = vadd.xlane.f32.xlu1 %v1861_v40 }
 0x763   :  { %v3008_v59 = vpop.eup %3007 }
 0x764   :  { %v1864_v58 = vsel %vm481_vm4, %v3008_v59, 0.0 }
 0x765   :  { %1865 = vadd.xlane.f32.xlu0 %v1864_v58 }
 0x7e6   :  { %v1857_v60 = vpop.xlane.xlu1 %1856 }
 0x7e7   :  { %3009 = vrcp.f32 %v1857_v60 }
 0x7ea   :  { %v1860_v45 = vpop.xlane.xlu0 %1859 }
 0x7eb   :  { %3011 = vrcp.f32 %v1860_v45 }
 0x7ee   :  { %v1863_v61 = vpop.xlane.xlu1 %1862 }
 0x7ef   :  { %3013 = vrcp.f32 %v1863_v61 }
 0x7f1   :  { %v3010_v63 = vpop.eup %3009 }
 0x7f2   :  { %v1871_v30 = vmul.f32 %v3010_v63, %v1857_v60  ;;  %v1866_v31 = vpop.xlane.xlu0 %1865 }
 0x7f3   :  { %3015 = vrcp.f32 %v1866_v31 }
 0x7f4   :  { %v1875_v32 = vsub.f32 2.0, %v1871_v30 }
 0x7f5   :  { %v3012_v33 = vpop.eup %3011 }
 0x7f6   :  { %v1879_v50 = vmul.f32 %v3010_v63, %v1875_v32  ;;  %v1872_v51 = vmul.f32 %v3012_v33, %v1860_v45 }
 0x7f8   :  { %v1883_v1 = vmul.f32 %v3002_v28, %v1879_v50  ;;  %v1876_v57 = vsub.f32 2.0, %v1872_v51  ;;  %v54_v28 = vld [vmem:[#allocation5 + $0x70] sm:$0xff]  ;;  %v2620_v51 = vld [vmem:[#allocation5 + $0x88] ss:$0 sm:$0xff] }
 0x7f9   :  { %v3014_v3 = vpop.eup %3013 }
 0x7fa   :  { %v1880_v5 = vmul.f32 %v3012_v33, %v1876_v57  ;;  %v1873_v6 = vmul.f32 %v3014_v3, %v1863_v61  ;;  %2854 = vmatpush3.xpose.msk.msra.mxu0 %vm481_vm4, %v1883_v1 }
 0x7fb   :  { %2858 = vmatprep.subr.mxu0 %v3094_v29 }
 0x7fc   :  { %v1884_v62 = vmul.f32 %v3004_v53, %v1880_v5  ;;  %v1877_v9 = vsub.f32 2.0, %v1873_v6 }
 0x7fd   :  { %v3016_v10 = vpop.eup %3015  ;;  %2856 = vmatmul.mubr.msk.f32.vlgmr.msra.gmra.mrb[26].mxu0 %vm481_vm4, %v1389_v7 }
 0x7fe   :  { %v1881_v0 = vmul.f32 %v3014_v3, %v1877_v9  ;;  %v1874_v11 = vmul.f32 %v3016_v10, %v1866_v31  ;;  %2859 = vmatpush3.xpose.msk.msra.mxu0 %vm481_vm4, %v1884_v62  ;;  %2860 = vmatprep.mubr.msk.f32.mxu0 %vm3095_vm3, %v3094_v29 }
 0x7ff   :  { %2868 = vmatprep.subr.mxu0 %v3094_v29 }
 0x800   :  { %v1885_v13 = vmul.f32 %v3006_v54, %v1881_v0  ;;  %v1878_v21 = vsub.f32 2.0, %v1874_v11 }
 0x801   :  { %2861 = vmatmul.mubr.msk.f32.vlgmr.msra.gmra.mrb[28].mxu0 %vm481_vm4, %v1394_v12 }
 0x802   :  { %v1882_v14 = vmul.f32 %v3016_v10, %v1878_v21  ;;  %2864 = vmatpush3.xpose.msk.msra.mxu1 %vm481_vm4, %v1885_v13  ;;  %2870 = vmatprep.mubr.msk.f32.mxu0 %vm3095_vm3, %v3094_v29 }
 0x804   :  { %v1886_v17 = vmul.f32 %v3008_v59, %v1882_v14 }
 0x805   :  { %2866 = vmatmul.mubr.msk.f32.vlgmr.msra.gmra.mrb[34].mxu1 %vm481_vm4, %v1399_v15 }
 0x806   :  { %2869 = vmatpush3.xpose.msk.msra.mxu0 %vm481_vm4, %v1886_v17  ;;  %2881 = vmatprep.mubr.msk.f32.mxu1 %vm62_vm0, %v53_v19 }
 0x809   :  { %2871 = vmatmul.mubr.msk.f32.vlgmr.msra.gmra.mrb[30].mxu0 %vm481_vm4, %v1404_v55 }
 0x8d0   :  { %v1959_v37 = vpop.f32.mrb[26].mxu0 }
 0x8d1   :  { %v2857_v38 = vpop.f32.mrb[27].mxu0 }
 0x8d4   :  { %v2035_v41 = vpop.f32.mrb[28].mxu0 }
 0x8d5   :  { %v2965_v16 = vpack.i.bf16 %v2035_v41, %v1959_v37  ;;  %v2862_v20 = vpop.f32.mrb[29].mxu0 }
 0x8d7   :  { %2966 = vrot.lane.b32.xlu1 %v2965_v16, %s3091_s20 }
 0x8d8   :  { %v2111_v29 = vpop.f32.mrb[34].mxu1 }
 0x8d9   :  { %v2867_v46 = vpop.f32.mrb[35].mxu1 }
 0x8dc   :  { %v2187_v43 = vpop.f32.mrb[30].mxu0 }
 0x8dd   :  { %v2970_v26 = vpack.i.bf16 %v2187_v43, %v2111_v29  ;;  %v2872_v44 = vpop.f32.mrb[31].mxu0 }
 0x8df   :  { %2971 = vrot.lane.b32.xlu0 %v2970_v26, %s3091_s20 }
 0x8fd   :  { %2312 = vxpose.xlu0.b32.start.end [1/1] (short) (narrow) %v3155_v8, 16 }
 0x949   :  { %v2967_v56 = vpop.permute.xlu1 %2966 }
 0x94a   :  { %v2969_v42 = vunpack.i.h.bf16 %v2967_v56  ;;  %v2968_v18 = vunpack.i.l.bf16 %v2967_v56 }
 0x94c   :  { %v2207_v22 = vsel %vm481_vm4, %v3354_v36, %v2968_v18  ;;  %v2208_v24 = vsel %vm481_vm4, %v3414_v2, %v2969_v42  ;;  %v55_v36 = vld [vmem:[#allocation5 + $0x78] sm:$0xff]  ;;  %v56_v2 = vld [vmem:[#allocation5 + $0x80] sm:$0xff] }
 0x94d   :  { %v2921_v23 = vpack.c.bf16 %v2208_v24, %v2207_v22 }
 0x94f   :  { %2922 = vmatprep.subr.bf16.mxu1 %v2921_v23 }
 0x950   :  { %2924 = vmatpush3.bf16.msra.mxu1 %v2921_v23 }
 0x951   :  { %v2972_v47 = vpop.permute.xlu0 %2971 }
 0x952   :  { %v2974_v25 = vunpack.i.h.bf16 %v2972_v47  ;;  %v2973_v48 = vunpack.i.l.bf16 %v2972_v47 }
 0x954   :  { %v2209_v49 = vsel %vm481_vm4, %v3356_v39, %v2973_v48  ;;  %v2210_v8 = vsel %vm481_vm4, %v3416_v4, %v2974_v25 }
 0x955   :  { %v2925_v35 = vpack.c.bf16 %v2210_v8, %v2209_v49 }
 0x957   :  { %2926 = vmatprep.subr.bf16.mxu1 %v2925_v35 }
 0x958   :  { %2928 = vmatpush3.bf16.msra.mxu1 %v2925_v35 }
 0x95b   :  { %2882 = vmatmul.mubr.msk.f32.vlgmr.msra.gmra.mrb[36].mxu1 %vm62_vm0, %v54_v28 }
 0x95c   :  { %2884 = vmatprep.mubr.msk.f32.mxu1 %vm62_vm0, %v55_v36 }
 0x95f   :  { %2885 = vmatmul.mubr.msk.f32.gmra.mrb[38].mxu1 %vm62_vm0, %v56_v2 }
 0x97d   :  { %v2328_v54 = vpop.trf.xlu0 }
 0x97e   :  { %2895 = vmatprep.mubr.msk.f32.mxu0 %vm481_vm4, %v2328_v54  ;;  %2906 = vmatprep.mubr.msk.f32.mxu1 %vm481_vm4, %v2328_v54 }
 0x981   :  { %v2329_v60 = vpop.trf.xlu0 }
 0xa2e   :  { %v2883_v52 = vpop.f32.mrb[36].mxu1 }
 0xa2f   :  { %v2289_v34 = vpop.f32.mrb[37].mxu1 }
 0xa30   :  { %v2975_v4 = vpack.i.bf16 %v2883_v52, %v2289_v34  ;;  %v2929_v53 = vpack.c.bf16 %v2883_v52, %v2289_v34 }
 0xa32   :  { %2976 = vrot.lane.b32.xlu1 %v2975_v4, %s3097_s6  ;;  %2931 = vmatprep.subr.msk.bf16.mxu0 %vm3467_vm5, %v2929_v53  ;;  %v2886_v27 = vpop.f32.mrb[38].mxu1 }
 0xa33   :  { %2934 = vmatpush3.bf16.xpose.msk.msra.mxu0 %vm3467_vm5, %v2929_v53  ;;  %v2299_v40 = vpop.f32.mrb[39].mxu1 }
 0xa34   :  { %v2980_v59 = vpack.i.bf16 %v2886_v27, %v2299_v40  ;;  %v2935_v58 = vpack.c.bf16 %v2886_v27, %v2299_v40 }
 0xa36   :  { %2981 = vrot.lane.b32.xlu1 %v2980_v59, %s3097_s6  ;;  %2937 = vmatprep.subr.msk.bf16.mxu0 %vm3467_vm5, %v2935_v58 }
 0xa3b   :  { %2940 = vmatpush3.bf16.xpose.msk.msra.mxu0 %vm3467_vm5, %v2935_v58 }
 0xa42   :  { %2896 = vmatmul.mubr.msk.f32.vlgmr.msra.gmra.mrb[32].mxu0 %vm481_vm4, %v2329_v60 }
 0xaa4   :  { %v2977_v45 = vpop.permute.xlu1 %2976 }
 0xaa5   :  { %v2979_v61 = vunpack.i.h.bf16 %v2977_v45  ;;  %v2978_v63 = vunpack.i.l.bf16 %v2977_v45 }
 0xaa7   :  { %v2941_v30 = vpack.c.bf16 %v2979_v61, %v2978_v63 }
 0xaa8   :  { %v2982_v31 = vpop.permute.xlu1 %2981 }
 0xaa9   :  { %2943 = vmatprep.subr.msk.bf16.mxu1 %vm3467_vm5, %v2941_v30  ;;  %v2984_v32 = vunpack.i.h.bf16 %v2982_v31  ;;  %v2983_v33 = vunpack.i.l.bf16 %v2982_v31 }
 0xaaa   :  { %2946 = vmatpush3.bf16.xpose.msk.msra.mxu1 %vm3467_vm5, %v2941_v30 }
 0xaab   :  { %v2947_v50 = vpack.c.bf16 %v2984_v32, %v2983_v33 }
 0xaad   :  { %2949 = vmatprep.subr.msk.bf16.mxu1 %vm3467_vm5, %v2947_v50 }
 0xab2   :  { %2952 = vmatpush3.bf16.xpose.msk.msra.mxu1 %vm3467_vm5, %v2947_v50 }
 0xab9   :  { %2907 = vmatmul.mubr.msk.f32.vlgmr.msra.gmra.mrb[40].mxu1 %vm481_vm4, %v2329_v60 }
 0xb15   :  { %v2897_v1 = vpop.f32.mrb[32].mxu0 }
 0xb16   :  { %v2434_v57 = vadd.f32 %v2897_v1, %v2620_v51  ;;  %v2428_v3 = vpop.f32.mrb[33].mxu0 }
 0xb17   :  { %v2429_v5 = vadd.f32 %v2620_v51, %v2428_v3 }
 0xb18   :  { %2529 = vst.msk [vmem:[#allocation7 + $0x8] sm:$0xff] %vm62_vm0, %v2434_v57 }
 0xb19   :  { %2528 = vst.msk [vmem:[#allocation7] sm:$0xff] %vm62_vm0, %v2429_v5 }
 0xb8c   :  { %v2908_v6 = vpop.f32.mrb[40].mxu1 }
 0xb8d   :  { %v2525_v7 = vadd.f32 %v2908_v6, %v2620_v51  ;;  %v2519_v62 = vpop.f32.mrb[41].mxu1 }
 0xb8e   :  { %v2520_v9 = vadd.f32 %v2620_v51, %v2519_v62 }
 0xb8f   :  { %2531 = vst.msk [vmem:[#allocation7 + $0x18] sm:$0xff] %vm62_vm0, %v2525_v7 }
 0xb90   :  { %2530 = vst.msk [vmem:[#allocation7 + $0x10] sm:$0xff] %vm62_vm0, %v2520_v9 }
 0xb91   :  { %3072 = shalt.err (!%p3069_p6)
}
 0xb92   :  { %s3073_s12 = scalar_lea.hbm %s3512_s2, 512 }
 0xb93   :  { %p3074_p7 = scmp.ne.s32.totalorder %s3512_s2, %s3073_s12  ;;  %p3077_p8 = scmp.lt.u32.totalorder %s3073_s12, %s3512_s2 }
 0xb95   :  { %p3079_p9 = pnand %p3077_p8, %p3074_p7 }
 0xb97   :  { %3082 = shalt.err (!%p3079_p9)
}
 0xb98   :  { %2543 = dma.vmem_to_hbm [thread:$0]  %s2538_s8, 512, %s3512_s2, [#allocation4], %s3090_s19, %s3090_s19, %s3091_s20  }
 0xb99   :  { %3087 = dma.done.wait [#allocation4], 512  }
 0xb9a   :  { %3088 = vsyncadd [#allocation4], 4294966784 }
 0xb9b   :  { %2547 = vsyncpa [#allocation3], 1 }
 0xb9c   :  { %2548 = vsyncpa [#allocation6], 1 }
 0xb9d   :  { %2549 = vsyncpa [#allocation4], 1 }

</bundles_post_ra>
